<compile_context>
chip_gen: v5e
topology: v5e:2x2
jax: 0.10.0
libtpu: 0.0.40
codegen_flags: <defaults>
</compile_context>

<pallas_src>
import jax
import jax.numpy as jnp
from jax.experimental import pallas as pl
from jax.experimental.pallas import tpu as pltpu

HIDDEN_DIM = 128
_LANE = 128


def _round_up(n, m):
    return ((n + m - 1) // m) * m


def value_net_kernel(xT_ref, w1T_ref, b1_ref, w2_ref, b2_ref, o_ref):
    # fc1 on the MXU: (H, S) @ (S, TB) -> (H, TB), f32 accumulation,
    # DEFAULT precision (single bf16 pass).
    h = jnp.dot(w1T_ref[...], xT_ref[...], preferred_element_type=jnp.float32)
    h = jnp.maximum(h + b1_ref[...], 0.0)          # bias + ReLU in f32 on the VPU
    # fc2 on the MXU: (1, H) @ (H, TB) -> (1, TB); already lane-dense output row.
    v = jnp.dot(w2_ref[...], h, preferred_element_type=jnp.float32) + b2_ref[0]
    o_ref[...] = v.astype(o_ref.dtype)


def value_net_forward(x, w1, b1, w2, b2, *, block_b=4096, min_tiles=4):
    """x:(B,S); w1:(S,H); b1:(1,H) or (H,); w2:(1,H); b2:(1,)  ->  (B,1)."""
    B, S = x.shape
    H = w1.shape[1]

    # Wrapper-side relayout (cheap one-off HBM passes; kernel is nowhere near
    # HBM-bound): batch goes to the lane axis, weights to matmul-ready layout.
    xT = x.T                        # (S, B)
    w1T = w1.T                      # (H, S)
    b1c = b1.reshape(H, 1)          # (H, 1) column bias, broadcasts over lanes
    w2r = w2.reshape(1, H)          # (1, H)
    b2v = b2.reshape(1)             # (1,)  -> SMEM scalar

    # Batch tile: lane-aligned (multiple of 128) unless the whole batch fits in
    # one sub-128 block; capped at block_b and sized for >= min_tiles tiles so
    # the "parallel" grid axis can shard across v7x's 2 TensorCores.
    if B <= _LANE:
        TB = B
    else:
        TB = min(block_b, max(_LANE, _round_up(pl.cdiv(B, min_tiles), _LANE)))
    num_tiles = pl.cdiv(B, TB)      # partial last block allowed (no jnp.pad)

    out = pl.pallas_call(
        value_net_kernel,
        out_shape=jax.ShapeDtypeStruct((1, B), x.dtype),
        grid=(num_tiles,),
        in_specs=[
            pl.BlockSpec((S, TB), lambda i: (0, i)),   # xT: streamed per batch tile
            pl.BlockSpec((H, S), lambda i: (0, 0)),    # w1T: VMEM-resident
            pl.BlockSpec((H, 1), lambda i: (0, 0)),    # b1 column: VMEM-resident
            pl.BlockSpec((1, H), lambda i: (0, 0)),    # w2 row: VMEM-resident
            pl.BlockSpec(memory_space=pltpu.MemorySpace.SMEM),  # b2 scalar
        ],
        out_specs=pl.BlockSpec((1, TB), lambda i: (0, i)),      # lane-dense row
        compiler_params=pltpu.CompilerParams(
            dimension_semantics=("parallel",)),
    )(xT, w1T, b1c, w2r, b2v)
    return out.reshape(B, 1)


def init_params(key, state_dim, hidden_dim, dtype=jnp.float32):
    """Deterministic init mimicking torch.nn.Linear (uniform +/- 1/sqrt(fan_in))."""
    k1, k2, k3, k4 = jax.random.split(key, 4)
    bound1 = 1.0 / jnp.sqrt(state_dim)
    bound2 = 1.0 / jnp.sqrt(hidden_dim)
    w1 = jax.random.uniform(k1, (state_dim, hidden_dim), dtype, -bound1, bound1)
    b1 = jax.random.uniform(k2, (1, hidden_dim), dtype, -bound1, bound1)
    w2 = jax.random.uniform(k3, (1, hidden_dim), dtype, -bound2, bound2)
    b2 = jax.random.uniform(k4, (1,), dtype, -bound2, bound2)
    return w1, b1, w2, b2


if __name__ == "__main__":
    key = jax.random.PRNGKey(0)
    kx, kp, kx2 = jax.random.split(key, 3)

    batch, state_dim = 4, 8
    x = jax.random.normal(kx, (batch, state_dim), jnp.float32)
    w1, b1, w2, b2 = init_params(kp, state_dim, HIDDEN_DIM)

    def reference(xs):
        # Same DEFAULT matmul precision as the kernel (single-pass bf16 MXU).
        h = jnp.maximum(jnp.dot(xs, w1) + b1, 0.0)
        return jnp.dot(h, w2.T) + b2

    out = jax.block_until_ready(value_net_forward(x, w1, b1, w2, b2))
    ref = reference(x)
    assert out.shape == (batch, 1)
    assert jnp.allclose(out, ref, atol=2e-2, rtol=2e-2)

    # Also exercise the multi-tile gridded path with a partial last block.
    big_b = 1000
    xb = jax.random.normal(kx2, (big_b, state_dim), jnp.float32)
    out_b = jax.block_until_ready(value_net_forward(xb, w1, b1, w2, b2))
    assert out_b.shape == (big_b, 1)
    assert jnp.allclose(out_b, reference(xb), atol=2e-2, rtol=2e-2)

    print("KERNEL_OK")
</pallas_src>

<mosaic_0001>
module attributes {stable_mosaic.version = 11 : i64} {
  func.func @value_net_kernel(%arg0: i32, %arg1: memref<8x4xf32, #tpu.memory_space<vmem>>, %arg2: memref<128x8xf32, #tpu.memory_space<vmem>>, %arg3: memref<128x1xf32, #tpu.memory_space<vmem>>, %arg4: memref<1x128xf32, #tpu.memory_space<vmem>>, %arg5: memref<1xf32, #tpu.memory_space<smem>>, %arg6: memref<1x4xf32, #tpu.memory_space<vmem>>) attributes {dimension_semantics = [#tpu.dimension_semantics<parallel>], iteration_bounds = array<i64: 1>, scalar_prefetch = 0 : i64, scratch_operands = 0 : i64, tpu.core_type = #tpu.core_type<tc>, window_params = [{transform_indices = @transform_0, window_bounds = array<i64: 8, 4>}, {pipeline_mode = #tpu.pipeline_mode<synchronous>, transform_indices = @transform_1, window_bounds = array<i64: 128, 8>}, {pipeline_mode = #tpu.pipeline_mode<synchronous>, transform_indices = @transform_2, window_bounds = array<i64: 128, 1>}, {pipeline_mode = #tpu.pipeline_mode<synchronous>, transform_indices = @transform_3, window_bounds = array<i64: 1, 128>}, {transform_indices = @transform_4, window_bounds = array<i64: 1>}, {transform_indices = @transform_5, window_bounds = array<i64: 1, 4>}]} {
    %c0 = arith.constant 0 : index
    %c0_0 = arith.constant 0 : index
    %0 = vector.load %arg2[%c0, %c0_0] : memref<128x8xf32, #tpu.memory_space<vmem>>, vector<128x8xf32>
    %c0_1 = arith.constant 0 : index
    %c0_2 = arith.constant 0 : index
    %1 = vector.load %arg1[%c0_1, %c0_2] : memref<8x4xf32, #tpu.memory_space<vmem>>, vector<8x4xf32>
    %cst = arith.constant dense<0.000000e+00> : vector<128x4xf32>
    %2 = tpu.matmul %0, %1, %cst {dimension_numbers = #tpu.dot_dimension_numbers<[1], [0], [0], [1], [0, 0, 1, 1], [], []>} : vector<128x8xf32>, vector<8x4xf32>, vector<128x4xf32> -> vector<128x4xf32>
    %c0_3 = arith.constant 0 : index
    %c0_4 = arith.constant 0 : index
    %3 = vector.load %arg3[%c0_3, %c0_4] : memref<128x1xf32, #tpu.memory_space<vmem>>, vector<128x1xf32>
    %4 = vector.broadcast %3 : vector<128x1xf32> to vector<128x4xf32>
    %5 = arith.addf %2, %4 : vector<128x4xf32>
    %cst_5 = arith.constant 0.000000e+00 : f32
    %6 = vector.broadcast %cst_5 : f32 to vector<128x4xf32>
    %7 = arith.maximumf %5, %6 : vector<128x4xf32>
    %c0_6 = arith.constant 0 : index
    %c0_7 = arith.constant 0 : index
    %8 = vector.load %arg4[%c0_6, %c0_7] : memref<1x128xf32, #tpu.memory_space<vmem>>, vector<1x128xf32>
    %cst_8 = arith.constant dense<0.000000e+00> : vector<1x4xf32>
    %9 = tpu.matmul %8, %7, %cst_8 {dimension_numbers = #tpu.dot_dimension_numbers<[1], [0], [0], [1], [0, 0, 1, 1], [], []>} : vector<1x128xf32>, vector<128x4xf32>, vector<1x4xf32> -> vector<1x4xf32>
    %c0_9 = arith.constant 0 : index
    %10 = memref.load %arg5[%c0_9] : memref<1xf32, #tpu.memory_space<smem>>
    %11 = vector.broadcast %10 : f32 to vector<1x4xf32>
    %12 = arith.addf %9, %11 : vector<1x4xf32>
    %c0_10 = arith.constant 0 : index
    %c0_11 = arith.constant 0 : index
    %13 = vector.load %arg6[%c0_10, %c0_11] : memref<1x4xf32, #tpu.memory_space<vmem>>, vector<1x4xf32>
    tpu.vector_store %arg6[%c0_10, %c0_11], %12 {strides = array<i32>} : memref<1x4xf32, #tpu.memory_space<vmem>>, vector<1x4xf32>,
    return
  }
  func.func @transform_0(%arg0: i32) -> (i32, i32) {
    %c0_i32 = arith.constant 0 : i32
    %c0_i32_0 = arith.constant 0 : i32
    return %c0_i32, %arg0 : i32, i32
  }
  func.func @transform_1(%arg0: i32) -> (i32, i32) {
    %c0_i32 = arith.constant 0 : i32
    %c0_i32_0 = arith.constant 0 : i32
    %c0_i32_1 = arith.constant 0 : i32
    return %c0_i32, %c0_i32_0 : i32, i32
  }
  func.func @transform_2(%arg0: i32) -> (i32, i32) {
    %c0_i32 = arith.constant 0 : i32
    %c0_i32_0 = arith.constant 0 : i32
    %c0_i32_1 = arith.constant 0 : i32
    return %c0_i32, %c0_i32_0 : i32, i32
  }
  func.func @transform_3(%arg0: i32) -> (i32, i32) {
    %c0_i32 = arith.constant 0 : i32
    %c0_i32_0 = arith.constant 0 : i32
    %c0_i32_1 = arith.constant 0 : i32
    return %c0_i32, %c0_i32_0 : i32, i32
  }
  func.func @transform_4(%arg0: i32) -> i32 {
    %c0_i32 = arith.constant 0 : i32
    %c0_i32_0 = arith.constant 0 : i32
    return %c0_i32 : i32
  }
  func.func @transform_5(%arg0: i32) -> (i32, i32) {
    %c0_i32 = arith.constant 0 : i32
    %c0_i32_0 = arith.constant 0 : i32
    return %c0_i32, %arg0 : i32, i32
  }
}

</mosaic_0001>

<bundles_post_ra>
// kernel: tpu_custom_call.1
= control target key start
LH: loop header
LB: loop body
LE: loop exit
PB: predicated region body
PF: predicated region fallthrough
CT: control target
= control target key end

     0   :  { %vm135_vm0 = vcmask 64512   ;;  %v355_v3 = vmov 0   ;;  %s517_s0 = inlined_call_operand.vmem [shape: f32[8,4], index: 0, kind: input, shape index: {}]   ;;  %s518_s1 = inlined_call_operand.vmem [shape: f32[128,8], index: 1, kind: input, shape index: {}]   ;;  %s519_s2 = inlined_call_operand.vmem [shape: f32[128,1], index: 2, kind: input, shape index: {}]   ;;  %s520_s3 = inlined_call_operand.vmem [shape: f32[1,128], index: 3, kind: input, shape index: {}]   ;;  %s521_s4 = inlined_call_operand.<no memory space> [shape: f32[1], index: 4, kind: input, shape index: {}]   ;;  %s522_s5 = inlined_call_operand.hbm [shape: f32[1,4], index: 5, kind: output, shape index: {}]  }
   0x1   :  { %v38_v0 = vld [vmem:[%s517_s0] sm:$0xff]  ;;  %v54_v1 = vld [vmem:[%s519_s2 + $0x78] sm:$0xff]  ;;  %326 = vset.pattern.permute.xlu0 %v355_v3  ;;  %v28_v4 = vld [vmem:[%s518_s1 + $0x30] sm:$0xff]  ;;  %327 = vset.pattern.permute.xlu1 %v355_v3 }
   0x2   :  { %v22_v2 = vld [vmem:[%s518_s1] sm:$0xff]  ;;  %199 = vmatpush.msra.mxu0 %v38_v0  ;;  %322 = vmatpush.msra.mxu2 %v38_v0  ;;  %v52_v6 = vld [vmem:[%s519_s2 + $0x68] sm:$0xff]  ;;  %v50_v7 = vld [vmem:[%s519_s2 + $0x58] sm:$0xff] }
   0x3   :  { %v34_v5 = vld [vmem:[%s518_s1 + $0x60] sm:$0xff]  ;;  %323 = vmatpush.msra.mxu3 %v38_v0  ;;  %132 = vperm.xlu0 %326, %v54_v1   ;;  %v53_v8 = vld [vmem:[%s519_s2 + $0x70] sm:$0xff]  ;;  %v23_v9 = vld [vmem:[%s518_s1 + $0x8] sm:$0xff] }
   0x4   :  { %306 = vmatmul.msk.f32.vlgmr.msra.gmra.mxu0 %vm135_vm0, %v22_v2  ;;  %312 = vmatmul.msk.f32.vlgmr.msra.gmra.mxu2 %vm135_vm0, %v28_v4  ;;  %v29_v10 = vld [vmem:[%s518_s1 + $0x38] sm:$0xff]  ;;  %v35_v11 = vld [vmem:[%s518_s1 + $0x68] sm:$0xff] }
   0x5   :  { %318 = vmatmul.msk.f32.vlgmr.msra.gmra.mxu3 %vm135_vm0, %v34_v5  ;;  %328 = vset.pattern.permute.xlu2 %v355_v3 }
   0x6   :  { %122 = vperm.xlu1 %327, %v52_v6   ;;  %112 = vperm.xlu2 %328, %v50_v7  }
   0x7   :  { %11 = vsyncpa [#allocation4], 0  ;;  %v51_v12 = vld [vmem:[%s519_s2 + $0x60] sm:$0xff]  ;;  %v49_v13 = vld [vmem:[%s519_s2 + $0x50] sm:$0xff]  ;;  %s356_s8 = smov [#allocation3]   ;;  %s297_s12 = sshll.u32 %s522_s5, 4  ;;  %s298_s12 = int_to_ptr.hbm [resolvable:$true] %s297_s12 }
   0x8   :  { %v48_v14 = vld [vmem:[%s519_s2 + $0x48] sm:$0xff]  ;;  %v24_v15 = vld [vmem:[%s518_s1 + $0x10] sm:$0xff]  ;;  %v30_v16 = vld [vmem:[%s518_s1 + $0x40] sm:$0xff]  ;;  %s295_s9 = sshll.u32 %s356_s8, 4  ;;  %vm288_vm1 = vcmask 24576   ;;  %s296_s9 = int_to_ptr.vmem [resolvable:$true] %s295_s9 }
   0x9   :  { %v36_v17 = vld [vmem:[%s518_s1 + $0x70] sm:$0xff]  ;;  %v47_v18 = vld [vmem:[%s519_s2 + $0x40] sm:$0xff]  ;;  %v46_v19 = vld [vmem:[%s519_s2 + $0x38] sm:$0xff] }
   0xa   :  { %v45_v20 = vld [vmem:[%s519_s2 + $0x30] sm:$0xff]  ;;  %v25_v21 = vld [vmem:[%s518_s1 + $0x18] sm:$0xff]  ;;  %v31_v22 = vld [vmem:[%s518_s1 + $0x48] sm:$0xff] }
   0xb   :  { %127 = vperm.xlu0 %326, %v53_v8   ;;  %v37_v23 = vld [vmem:[%s518_s1 + $0x78] sm:$0xff]  ;;  %v44_v24 = vld [vmem:[%s519_s2 + $0x28] sm:$0xff]  ;;  %v43_v25 = vld [vmem:[%s519_s2 + $0x20] sm:$0xff] }
   0xc   :  { %307 = vmatmul.msk.f32.gmra.mxu0 %vm135_vm0, %v23_v9  ;;  %313 = vmatmul.msk.f32.gmra.mxu2 %vm135_vm0, %v29_v10  ;;  %v42_v26 = vld [vmem:[%s519_s2 + $0x18] sm:$0xff]  ;;  %v26_v27 = vld [vmem:[%s518_s1 + $0x20] sm:$0xff]  ;;  %v32_v28 = vld [vmem:[%s518_s1 + $0x50] sm:$0xff] }
   0xd   :  { %319 = vmatmul.msk.f32.gmra.mxu3 %vm135_vm0, %v35_v11  ;;  %v41_v29 = vld [vmem:[%s519_s2 + $0x10] sm:$0xff]  ;;  %v40_v30 = vld [vmem:[%s519_s2 + $0x8] sm:$0xff]  ;;  %v39_v31 = vld [vmem:[%s519_s2] sm:$0xff] }
   0xe   :  { %117 = vperm.xlu1 %327, %v51_v12   ;;  %107 = vperm.xlu2 %328, %v49_v13   ;;  %v27_v32 = vld [vmem:[%s518_s1 + $0x28] sm:$0xff]  ;;  %v33_v33 = vld [vmem:[%s518_s1 + $0x58] sm:$0xff] }
  0x13   :  { %102 = vperm.xlu0 %326, %v48_v14  }
  0x14   :  { %308 = vmatmul.msk.f32.gmra.mxu0 %vm135_vm0, %v24_v15  ;;  %314 = vmatmul.msk.f32.gmra.mxu2 %vm135_vm0, %v30_v16 }
  0x15   :  { %320 = vmatmul.msk.f32.gmra.mxu3 %vm135_vm0, %v36_v17 }
  0x16   :  { %97 = vperm.xlu1 %327, %v47_v18   ;;  %92 = vperm.xlu2 %328, %v46_v19  }
  0x1b   :  { %87 = vperm.xlu0 %326, %v45_v20  }
  0x1c   :  { %309 = vmatmul.msk.f32.gmra.mxu0 %vm135_vm0, %v25_v21  ;;  %315 = vmatmul.msk.f32.gmra.mxu2 %vm135_vm0, %v31_v22 }
  0x1d   :  { %321 = vmatmul.msk.f32.gmra.mxu3 %vm135_vm0, %v37_v23 }
  0x1e   :  { %82 = vperm.xlu1 %327, %v44_v24   ;;  %77 = vperm.xlu2 %328, %v43_v25  }
  0x23   :  { %72 = vperm.xlu0 %326, %v42_v26  }
  0x24   :  { %310 = vmatmul.msk.f32.gmra.mxu0 %vm135_vm0, %v26_v27  ;;  %316 = vmatmul.msk.f32.gmra.mxu2 %vm135_vm0, %v32_v28 }
  0x26   :  { %67 = vperm.xlu1 %327, %v41_v29   ;;  %62 = vperm.xlu2 %328, %v40_v30  }
  0x2b   :  { %57 = vperm.xlu0 %326, %v39_v31  }
  0x2c   :  { %311 = vmatmul.msk.f32.gmra.mxu0 %vm135_vm0, %v27_v32  ;;  %317 = vmatmul.msk.f32.gmra.mxu2 %vm135_vm0, %v33_v33 }
  0x60   :  { %v113_v42 = vpop.permute.xlu2 %112 }
  0x68   :  { %v108_v52 = vpop.permute.xlu2 %107 }
  0x70   :  { %v93_v63 = vpop.permute.xlu2 %92 }
  0x75   :  { %v133_v37 = vpop.permute.xlu0 %132 }
  0x78   :  { %v123_v41 = vpop.permute.xlu1 %122  ;;  %v78_v10 = vpop.permute.xlu2 %77 }
  0x7d   :  { %v128_v45 = vpop.permute.xlu0 %127 }
  0x80   :  { %v118_v47 = vpop.permute.xlu1 %117  ;;  %v63_v24 = vpop.permute.xlu2 %62 }
  0x81   :  { %v502_v34 = vpop.f32.mrf.mxu0 }
  0x85   :  { %v103_v55 = vpop.permute.xlu0 %102 }
  0x87   :  { %v219_v35 = vpop.f32.mrf.mxu2 }
  0x88   :  { %v237_v36 = vpop.f32.mrf.mxu3  ;;  %v98_v62 = vpop.permute.xlu1 %97 }
  0x89   :  { %v504_v38 = vpop.f32.mrf.mxu0  ;;  %v238_v57 = vadd.f32 %v237_v36, %v118_v47  ;;  %v267_v36 = vstv %s521_s4 }
  0x8a   :  { %v205_v29 = vadd.f32 %v504_v38, %v63_v24 }
  0x8b   :  { %v261_v61 = vmax.f32 %v238_v57, 0.0 }
  0x8c   :  { %v250_v32 = vmax.f32 %v205_v29, 0.0 }
  0x8d   :  { %v88_v0 = vpop.permute.xlu0 %87 }
  0x8e   :  { %v220_v15 = vadd.f32 %v219_v35, %v88_v0  ;;  %v265_v35 = vld [vmem:[%s520_s3] sm:$0x1] }
  0x8f   :  { %v222_v39 = vpop.f32.mrf.mxu2 }
  0x90   :  { %v240_v40 = vpop.f32.mrf.mxu3  ;;  %v83_v7 = vpop.permute.xlu1 %82  ;;  %v223_v11 = vadd.f32 %v222_v39, %v93_v63  ;;  %v255_v19 = vmax.f32 %v220_v15, 0.0 }
  0x91   :  { %v207_v46 = vpop.f32.mrf.mxu0  ;;  %v241_v53 = vadd.f32 %v240_v40, %v123_v41 }
  0x92   :  { %v256_v17 = vmax.f32 %v223_v11, 0.0 }
  0x93   :  { %v262_v59 = vmax.f32 %v241_v53, 0.0 }
  0x95   :  { %v73_v13 = vpop.permute.xlu0 %72 }
  0x97   :  { %v225_v43 = vpop.f32.mrf.mxu2 }
  0x98   :  { %v243_v44 = vpop.f32.mrf.mxu3  ;;  %v226_v8 = vadd.f32 %v225_v43, %v98_v62  ;;  %v68_v21 = vpop.permute.xlu1 %67 }
  0x99   :  { %v244_v50 = vadd.f32 %v243_v44, %v128_v45  ;;  %v210_v56 = vpop.f32.mrf.mxu0  ;;  %v208_v25 = vadd.f32 %v207_v46, %v68_v21 }
  0x9a   :  { %v257_v16 = vmax.f32 %v226_v8, 0.0  ;;  %v211_v22 = vadd.f32 %v210_v56, %v73_v13 }
  0x9b   :  { %v263_v58 = vmax.f32 %v244_v50, 0.0  ;;  %v251_v31 = vmax.f32 %v208_v25, 0.0 }
  0x9c   :  { %v252_v28 = vmax.f32 %v211_v22, 0.0 }
  0x9d   :  { %v58_v27 = vpop.permute.xlu0 %57 }
  0x9e   :  { %v202_v30 = vadd.f32 %v502_v34, %v58_v27 }
  0x9f   :  { %v228_v48 = vpop.f32.mrf.mxu2 }
  0xa0   :  { %v246_v49 = vpop.f32.mrf.mxu3  ;;  %v229_v5 = vadd.f32 %v228_v48, %v103_v55  ;;  %v249_v33 = vmax.f32 %v202_v30, 0.0 }
  0xa1   :  { %v247_v51 = vadd.f32 %v246_v49, %v133_v37  ;;  %v213_v1 = vpop.f32.mrf.mxu0 }
  0xa2   :  { %v258_v12 = vmax.f32 %v229_v5, 0.0  ;;  %v214_v20 = vadd.f32 %v213_v1, %v78_v10 }
  0xa3   :  { %v264_v54 = vmax.f32 %v247_v51, 0.0 }
  0xa4   :  { %v253_v26 = vmax.f32 %v214_v20, 0.0 }
  0xa5   :  { %268 = vmatpush.msra.mxu1 %v264_v54 }
  0xa7   :  { %269 = vmatpush.msra.mxu1 %v263_v58  ;;  %v231_v60 = vpop.f32.mrf.mxu2 }
  0xa8   :  { %v232_v3 = vadd.f32 %v231_v60, %v108_v52 }
  0xa9   :  { %270 = vmatpush.msra.mxu1 %v262_v59  ;;  %v216_v14 = vpop.f32.mrf.mxu0 }
  0xaa   :  { %v259_v9 = vmax.f32 %v232_v3, 0.0  ;;  %v217_v18 = vadd.f32 %v216_v14, %v83_v7 }
  0xab   :  { %271 = vmatpush.msra.mxu1 %v261_v61 }
  0xac   :  { %v254_v23 = vmax.f32 %v217_v18, 0.0 }
  0xaf   :  { %v234_v2 = vpop.f32.mrf.mxu2 }
  0xb0   :  { %v235_v4 = vadd.f32 %v234_v2, %v113_v42 }
  0xb2   :  { %v260_v6 = vmax.f32 %v235_v4, 0.0 }
  0xb4   :  { %272 = vmatpush.msra.mxu1 %v260_v6 }
  0xb6   :  { %273 = vmatpush.msra.mxu1 %v259_v9 }
  0xb8   :  { %274 = vmatpush.msra.mxu1 %v258_v12 }
  0xba   :  { %275 = vmatpush.msra.mxu1 %v257_v16 }
  0xbc   :  { %276 = vmatpush.msra.mxu1 %v256_v17 }
  0xbe   :  { %277 = vmatpush.msra.mxu1 %v255_v19 }
  0xc0   :  { %278 = vmatpush.msra.mxu1 %v254_v23 }
  0xc2   :  { %279 = vmatpush.msra.mxu1 %v253_v26 }
  0xc4   :  { %280 = vmatpush.msra.mxu1 %v252_v28 }
  0xc6   :  { %281 = vmatpush.msra.mxu1 %v251_v31 }
  0xc8   :  { %282 = vmatpush.msra.mxu1 %v250_v32 }
  0xca   :  { %283 = vmatpush.msra.mxu1 %v249_v33 }
  0xcb   :  { %284 = vmatmul.f32.vlgmr.msra.gmra.mxu1 %v265_v35 }
 0x148   :  { %v285_v34 = vpop.f32.mrf.mxu1 }
 0x149   :  { %v286_v37 = vadd.f32 %v285_v34, %v267_v36 }
 0x14b   :  { %289 = vst.msk [vmem:[#allocation3] sm:$0x1] %vm288_vm1, %v286_v37 }
 0x14c   :  { %300 = dma.vmem_to_hbm [thread:$0]  %s296_s9, 16, %s298_s12, [#allocation4]  }
 0x14d   :  { %353 = dma.done.wait [#allocation4], 16  }
 0x14e   :  { %354 = vsyncadd [#allocation4], 4294967280 }
 0x14f   :  { %305 = vsyncpa [#allocation4], 1 }

</bundles_post_ra>
